<compile_context>
chip_gen: v7x
topology: tpu7x:2x2x1
jax: 0.10.0
libtpu: 0.0.40
codegen_flags: <defaults>
</compile_context>

<pallas_src>
import jax
import jax.numpy as jnp
from jax.experimental import pallas as pl
from jax.experimental.pallas import tpu as pltpu


# ----------------------------------------------------------------------------
# Kernel
# ----------------------------------------------------------------------------
def ffn_kernel(x_ref, w1_ref, w2_ref, w3_ref, b_ref, o_ref):
    """Fused 3-layer MLP + residual, natural [batch, features] layout.

    x_ref  : [tb, d_in]            f32
    w1_ref : [d_in,  d_hid]        f32  (pre-transposed, i.e. torch W1.T)
    w2_ref : [d_hid, d_hid]        f32
    w3_ref : [d_hid, d_out]        f32
    b_ref  : [1, 2*d_hid + d_out]  f32  (b1 | b2 | b3 packed along lanes)
    o_ref  : [tb, d_out]           f32
    """
    hid = w1_ref.shape[1]
    out = w3_ref.shape[1]

    x = x_ref[...]                                   # [tb, d_in]
    b1 = b_ref[:, 0:hid]                             # [1, hid]
    b2 = b_ref[:, hid:2 * hid]                       # [1, hid]
    b3 = b_ref[:, 2 * hid:2 * hid + out]             # [1, out]

    # layer 1: Linear + ReLU (f32 MXU accumulation)
    h = jnp.dot(x, w1_ref[...], preferred_element_type=jnp.float32) + b1
    h = jnp.maximum(h, 0.0)
    # layer 2: Linear + ReLU
    h = jnp.dot(h, w2_ref[...], preferred_element_type=jnp.float32) + b2
    h = jnp.maximum(h, 0.0)
    # layer 3: Linear (output_activation=None)
    y = jnp.dot(h, w3_ref[...], preferred_element_type=jnp.float32) + b3
    # Residual wrapper: input_dim == output_dim -> plain add.
    o_ref[...] = (x + y).astype(o_ref.dtype)


# ----------------------------------------------------------------------------
# Parameter prep (one-time): pre-transpose weights, pack biases.
# ----------------------------------------------------------------------------
def prepare_params(params):
    """params: list of (W [out,in], b [out]) in torch layout -> kernel operands."""
    (w1, b1), (w2, b2), (w3, b3) = params
    w1t = jnp.asarray(w1, jnp.float32).T             # [in,  hid]
    w2t = jnp.asarray(w2, jnp.float32).T             # [hid, hid]
    w3t = jnp.asarray(w3, jnp.float32).T             # [hid, out]
    b_packed = jnp.concatenate(
        [jnp.asarray(b1, jnp.float32).reshape(1, -1),
         jnp.asarray(b2, jnp.float32).reshape(1, -1),
         jnp.asarray(b3, jnp.float32).reshape(1, -1)], axis=1)  # [1, 2*hid+out]
    return w1t, w2t, w3t, b_packed


# ----------------------------------------------------------------------------
# Wrapper
# ----------------------------------------------------------------------------
_SINGLE_STEP_MAX = 2048   # one grid step up to this batch size
_TB_MAX = 2048            # batch-tile cap above that (well under scoped VMEM on all gens)


def feed_forward_block(x, prepared, *, tb=None):
    """x: [B, input_dim] f32. prepared: output of prepare_params. Returns [B, output_dim]."""
    w1t, w2t, w3t, b_packed = prepared
    B, d_in = x.shape
    d_hid = w1t.shape[1]
    d_out = w3t.shape[1]
    assert d_in == d_out, "residual add requires input_dim == output_dim"

    if tb is None:
        if B <= _SINGLE_STEP_MAX:
            tb = B            # single step; block == full batch dim (always legal)
        else:
            tb = _TB_MAX      # multiple of (8,128); partial last block masked by Pallas
    grid = (pl.cdiv(B, tb),)

    flops = 2 * B * (d_in * d_hid + d_hid * d_hid + d_hid * d_out)
    bytes_accessed = (x.size + B * d_out) * 4 \
        + (w1t.size + w2t.size + w3t.size + b_packed.size) * 4

    return pl.pallas_call(
        ffn_kernel,
        out_shape=jax.ShapeDtypeStruct((B, d_out), x.dtype),
        grid_spec=pltpu.PrefetchScalarGridSpec(
            num_scalar_prefetch=0,
            grid=grid,
            in_specs=[
                pl.BlockSpec((tb, d_in), lambda i: (i, 0)),      # activations, tiled on batch
                pl.BlockSpec(w1t.shape, lambda i: (0, 0)),       # weights stay VMEM-resident
                pl.BlockSpec(w2t.shape, lambda i: (0, 0)),
                pl.BlockSpec(w3t.shape, lambda i: (0, 0)),
                pl.BlockSpec(b_packed.shape, lambda i: (0, 0)),  # packed biases
            ],
            out_specs=pl.BlockSpec((tb, d_out), lambda i: (i, 0)),
        ),
        compiler_params=pltpu.CompilerParams(
            dimension_semantics=("parallel",),
        ),
        cost_estimate=pl.CostEstimate(
            flops=flops, transcendentals=0, bytes_accessed=bytes_accessed),
    )(x, w1t, w2t, w3t, b_packed)


# ----------------------------------------------------------------------------
# Init + pure-JAX reference (f32, matches the torch f32 module)
# ----------------------------------------------------------------------------
def init_linear(key, in_dim, out_dim):
    """Deterministic init mimicking torch.nn.Linear (uniform +/- 1/sqrt(in))."""
    kw, kb = jax.random.split(key)
    bound = 1.0 / jnp.sqrt(jnp.float32(in_dim))
    w = jax.random.uniform(kw, (out_dim, in_dim), jnp.float32, -bound, bound)  # torch [out, in]
    b = jax.random.uniform(kb, (out_dim,), jnp.float32, -bound, bound)
    return w, b


def reference_forward(x, params):
    (w1, b1), (w2, b2), (w3, b3) = params
    hp = jax.lax.Precision.HIGHEST
    h = jnp.maximum(jnp.dot(x, w1.T, precision=hp) + b1, 0.0)
    h = jnp.maximum(jnp.dot(h, w2.T, precision=hp) + b2, 0.0)
    y = jnp.dot(h, w3.T, precision=hp) + b3
    return x + y


if __name__ == "__main__":
    input_dim, hidden_dim, output_dim = 32, 64, 32

    key = jax.random.PRNGKey(0)
    kx, k1, k2, k3, kx2 = jax.random.split(key, 5)

    raw_params = [
        init_linear(k1, input_dim, hidden_dim),
        init_linear(k2, hidden_dim, hidden_dim),
        init_linear(k3, hidden_dim, output_dim),
    ]
    prepared = prepare_params(raw_params)   # one-time weight transpose + bias pack

    # Small batch: single grid step, no wrapper-side layout ops at all.
    x = jax.random.normal(kx, (16, input_dim), jnp.float32)
    out = jax.block_until_ready(feed_forward_block(x, prepared))
    ref = reference_forward(x, raw_params)
    assert out.shape == x.shape
    assert jnp.allclose(out, ref, atol=1e-4, rtol=1e-4), "mismatch vs reference (batch=16)"

    # Ragged / multi-step path: B=200 with tb=128 -> grid=2, last block partial
    # (exercises Pallas partial-block masking; no pad / slice in the wrapper).
    x2 = jax.random.normal(kx2, (200, input_dim), jnp.float32)
    out2 = jax.block_until_ready(feed_forward_block(x2, prepared, tb=128))
    ref2 = reference_forward(x2, raw_params)
    assert out2.shape == x2.shape
    assert jnp.allclose(out2, ref2, atol=1e-4, rtol=1e-4), "mismatch vs reference (batch=200)"

    print("KERNEL_OK")
</pallas_src>

<mosaic_0001>
module attributes {stable_mosaic.version = 11 : i64} {
  func.func @ffn_kernel(%arg0: i32, %arg1: memref<16x32xf32, #tpu.memory_space<vmem>>, %arg2: memref<32x64xf32, #tpu.memory_space<vmem>>, %arg3: memref<64x64xf32, #tpu.memory_space<vmem>>, %arg4: memref<64x32xf32, #tpu.memory_space<vmem>>, %arg5: memref<1x160xf32, #tpu.memory_space<vmem>>, %arg6: memref<16x32xf32, #tpu.memory_space<vmem>>) attributes {dimension_semantics = [#tpu.dimension_semantics<parallel>], iteration_bounds = array<i64: 1>, scalar_prefetch = 0 : i64, scratch_operands = 0 : i64, tpu.core_type = #tpu.core_type<tc>, window_params = [{transform_indices = @transform_0, window_bounds = array<i64: 16, 32>}, {pipeline_mode = #tpu.pipeline_mode<synchronous>, transform_indices = @transform_1, window_bounds = array<i64: 32, 64>}, {pipeline_mode = #tpu.pipeline_mode<synchronous>, transform_indices = @transform_2, window_bounds = array<i64: 64, 64>}, {pipeline_mode = #tpu.pipeline_mode<synchronous>, transform_indices = @transform_3, window_bounds = array<i64: 64, 32>}, {pipeline_mode = #tpu.pipeline_mode<synchronous>, transform_indices = @transform_4, window_bounds = array<i64: 1, 160>}, {transform_indices = @transform_5, window_bounds = array<i64: 16, 32>}]} {
    %c0 = arith.constant 0 : index
    %c0_0 = arith.constant 0 : index
    %0 = vector.load %arg1[%c0, %c0_0] : memref<16x32xf32, #tpu.memory_space<vmem>>, vector<16x32xf32>
    %c0_1 = arith.constant 0 : index
    %c0_2 = arith.constant 0 : index
    %1 = vector.load %arg5[%c0_1, %c0_2] : memref<1x160xf32, #tpu.memory_space<vmem>>, vector<1x64xf32>
    %c0_3 = arith.constant 0 : index
    %c64 = arith.constant 64 : index
    %2 = vector.load %arg5[%c0_3, %c64] : memref<1x160xf32, #tpu.memory_space<vmem>>, vector<1x64xf32>
    %c0_4 = arith.constant 0 : index
    %c128 = arith.constant 128 : index
    %3 = vector.load %arg5[%c0_4, %c128] : memref<1x160xf32, #tpu.memory_space<vmem>>, vector<1x32xf32>
    %c0_5 = arith.constant 0 : index
    %c0_6 = arith.constant 0 : index
    %4 = vector.load %arg2[%c0_5, %c0_6] : memref<32x64xf32, #tpu.memory_space<vmem>>, vector<32x64xf32>
    %cst = arith.constant dense<0.000000e+00> : vector<16x64xf32>
    %5 = tpu.matmul %0, %4, %cst {dimension_numbers = #tpu.dot_dimension_numbers<[1], [0], [0], [1], [0, 0, 1, 1], [], []>} : vector<16x32xf32>, vector<32x64xf32>, vector<16x64xf32> -> vector<16x64xf32>
    %6 = vector.broadcast %1 : vector<1x64xf32> to vector<16x64xf32>
    %7 = arith.addf %5, %6 : vector<16x64xf32>
    %cst_7 = arith.constant 0.000000e+00 : f32
    %8 = vector.broadcast %cst_7 : f32 to vector<16x64xf32>
    %9 = arith.maximumf %7, %8 : vector<16x64xf32>
    %c0_8 = arith.constant 0 : index
    %c0_9 = arith.constant 0 : index
    %10 = vector.load %arg3[%c0_8, %c0_9] : memref<64x64xf32, #tpu.memory_space<vmem>>, vector<64x64xf32>
    %cst_10 = arith.constant dense<0.000000e+00> : vector<16x64xf32>
    %11 = tpu.matmul %9, %10, %cst_10 {dimension_numbers = #tpu.dot_dimension_numbers<[1], [0], [0], [1], [0, 0, 1, 1], [], []>} : vector<16x64xf32>, vector<64x64xf32>, vector<16x64xf32> -> vector<16x64xf32>
    %12 = vector.broadcast %2 : vector<1x64xf32> to vector<16x64xf32>
    %13 = arith.addf %11, %12 : vector<16x64xf32>
    %cst_11 = arith.constant 0.000000e+00 : f32
    %14 = vector.broadcast %cst_11 : f32 to vector<16x64xf32>
    %15 = arith.maximumf %13, %14 : vector<16x64xf32>
    %c0_12 = arith.constant 0 : index
    %c0_13 = arith.constant 0 : index
    %16 = vector.load %arg4[%c0_12, %c0_13] : memref<64x32xf32, #tpu.memory_space<vmem>>, vector<64x32xf32>
    %cst_14 = arith.constant dense<0.000000e+00> : vector<16x32xf32>
    %17 = tpu.matmul %15, %16, %cst_14 {dimension_numbers = #tpu.dot_dimension_numbers<[1], [0], [0], [1], [0, 0, 1, 1], [], []>} : vector<16x64xf32>, vector<64x32xf32>, vector<16x32xf32> -> vector<16x32xf32>
    %18 = vector.broadcast %3 : vector<1x32xf32> to vector<16x32xf32>
    %19 = arith.addf %17, %18 : vector<16x32xf32>
    %20 = arith.addf %0, %19 : vector<16x32xf32>
    %c0_15 = arith.constant 0 : index
    %c0_16 = arith.constant 0 : index
    %21 = vector.load %arg6[%c0_15, %c0_16] : memref<16x32xf32, #tpu.memory_space<vmem>>, vector<16x32xf32>
    tpu.vector_store %arg6[%c0_15, %c0_16], %20 {strides = array<i32>} : memref<16x32xf32, #tpu.memory_space<vmem>>, vector<16x32xf32>,
    return
  }
  func.func @transform_0(%arg0: i32) -> (i32, i32) {
    %c0_i32 = arith.constant 0 : i32
    %c0_i32_0 = arith.constant 0 : i32
    return %arg0, %c0_i32 : i32, i32
  }
  func.func @transform_1(%arg0: i32) -> (i32, i32) {
    %c0_i32 = arith.constant 0 : i32
    %c0_i32_0 = arith.constant 0 : i32
    %c0_i32_1 = arith.constant 0 : i32
    return %c0_i32, %c0_i32_0 : i32, i32
  }
  func.func @transform_2(%arg0: i32) -> (i32, i32) {
    %c0_i32 = arith.constant 0 : i32
    %c0_i32_0 = arith.constant 0 : i32
    %c0_i32_1 = arith.constant 0 : i32
    return %c0_i32, %c0_i32_0 : i32, i32
  }
  func.func @transform_3(%arg0: i32) -> (i32, i32) {
    %c0_i32 = arith.constant 0 : i32
    %c0_i32_0 = arith.constant 0 : i32
    %c0_i32_1 = arith.constant 0 : i32
    return %c0_i32, %c0_i32_0 : i32, i32
  }
  func.func @transform_4(%arg0: i32) -> (i32, i32) {
    %c0_i32 = arith.constant 0 : i32
    %c0_i32_0 = arith.constant 0 : i32
    %c0_i32_1 = arith.constant 0 : i32
    return %c0_i32, %c0_i32_0 : i32, i32
  }
  func.func @transform_5(%arg0: i32) -> (i32, i32) {
    %c0_i32 = arith.constant 0 : i32
    %c0_i32_0 = arith.constant 0 : i32
    return %arg0, %c0_i32 : i32, i32
  }
}

</mosaic_0001>

<bundles_post_ra>
// kernel: tpu_custom_call.1
= control target key start
LH: loop header
LB: loop body
LE: loop exit
PB: predicated region body
PF: predicated region fallthrough
CT: control target
= control target key end

     0   :  { %10 = vsyncpa [#allocation3], 0  ;;  %s663_s0 = inlined_call_operand.hbm [shape: f32[16,32], index: 0, kind: input, shape index: {}]   ;;  %s664_s1 = inlined_call_operand.vmem [shape: f32[32,64], index: 1, kind: input, shape index: {}]   ;;  %s665_s2 = inlined_call_operand.vmem [shape: f32[64,64], index: 2, kind: input, shape index: {}]   ;;  %s666_s3 = inlined_call_operand.vmem [shape: f32[64,32], index: 3, kind: input, shape index: {}]   ;;  %s667_s4 = inlined_call_operand.vmem [shape: f32[1,160], index: 4, kind: input, shape index: {}]   ;;  %s668_s5 = inlined_call_operand.hbm [shape: f32[16,32], index: 5, kind: output, shape index: {}]  }
   0x1   :  { %11 = vsyncpa [#allocation4], 0  ;;  %s520_s18 = smov [#allocation2]   ;;  %s472_s22 = scalar_lea.hbm %s663_s0, 256 }
   0x2   :  { %s17_s19 = sshll.u32 %s520_s18, 4  ;;  %p473_p0 = scmp.ne.s32.totalorder %s663_s0, %s472_s22  ;;  %s18_s19 = int_to_ptr.vmem [resolvable:$true] %s17_s19 }
   0x3   :  { %p476_p1 = scmp.lt.u32.totalorder %s472_s22, %s663_s0 }
   0x5   :  { %p478_p2 = pnand %p476_p1, %p473_p0 }
   0x7   :  { %481 = shalt.err (!%p478_p2)
}
   0x8   :  { %s482_s27 = scalar_lea.vmem %s18_s19, 256  ;;  %p487_p4 = scmp.lt.s32.totalorder %s18_s19, %s18_s19 }
   0x9   :  { %p483_p3 = scmp.ne.s32.totalorder %s18_s19, %s482_s27  ;;  %p488_p5 = scmp.lt.s32.totalorder %s482_s27, %s482_s27 }
   0xb   :  { %p489_p6 = por %p488_p5, %p487_p4 }
   0xd   :  { %p490_p7 = pnand %p489_p6, %p483_p3 }
   0xf   :  { %493 = shalt.err (!%p490_p7)
}
  0x10   :  { %s521_s28 = smov 128   ;;  %s522_s29 = smov 8  }
  0x11   :  { %23 = dma.hbm_to_vmem [thread:$0]  %s663_s0, 256, %s18_s19, [#allocation3], %s521_s28, %s521_s28, %s522_s29  }
  0x12   :  { %516 = dma.done.wait [#allocation3], 256  }
  0x13   :  { %517 = vsyncadd [#allocation3], 4294967040  ;;  %vm49_vm0 = vcmask 261120   ;;  %v39_v0 = vld [vmem:[%s664_s1] sm:$0xff]  ;;  %v40_v1 = vld [vmem:[%s664_s1 + $0x8] sm:$0xff]  ;;  %vm144_vm1 = vcmask 523264  }
  0x14   :  { %v41_v2 = vld [vmem:[%s664_s1 + $0x10] sm:$0xff]  ;;  %v427_v3 = vpack.c.bf16 %v40_v1, %v39_v0  ;;  %v42_v4 = vld [vmem:[%s664_s1 + $0x18] sm:$0xff]  ;;  %v582_v5 = vld [vmem:[#allocation2] sm:$0xff] }
  0x15   :  { %v431_v6 = vpack.c.bf16 %v42_v4, %v41_v2  ;;  %386 = vmatprep.mubr.msk.f32.mxu0 %vm49_vm0, %v582_v5  ;;  %v133_v7 = vld [vmem:[%s665_s2] sm:$0xff]  ;;  %v134_v8 = vld [vmem:[%s665_s2 + $0x8] sm:$0xff]  ;;  %v135_v9 = vld [vmem:[%s665_s2 + $0x10] sm:$0xff] }
  0x16   :  { %428 = vmatprep.subr.bf16.mxu0 %v427_v3  ;;  %v435_v10 = vpack.c.bf16 %v134_v8, %v133_v7  ;;  %v136_v11 = vld [vmem:[%s665_s2 + $0x18] sm:$0xff]  ;;  %v137_v13 = vld [vmem:[%s665_s2 + $0x20] sm:$0xff]  ;;  %v138_v14 = vld [vmem:[%s665_s2 + $0x28] sm:$0xff] }
  0x17   :  { %430 = vmatpush3.bf16.msra.mxu0 %v427_v3  ;;  %v439_v12 = vpack.c.bf16 %v136_v11, %v135_v9  ;;  %v443_v15 = vpack.c.bf16 %v138_v14, %v137_v13  ;;  %v36_v16 = vld [vmem:[#allocation2 + $0x8] sm:$0xff]  ;;  %v139_v17 = vld [vmem:[%s665_s2 + $0x30] sm:$0xff]  ;;  %v140_v18 = vld [vmem:[%s665_s2 + $0x38] sm:$0xff]  ;;  %s523_s2 = smov 64  }
  0x18   :  { %432 = vmatprep.subr.bf16.mxu0 %v431_v6  ;;  %436 = vmatprep.subr.bf16.mxu1 %v435_v10  ;;  %v447_v19 = vpack.c.bf16 %v140_v18, %v139_v17  ;;  %v344_v20 = vld [vmem:[%s667_s4] ss:$0 sm:$0xff]  ;;  %v229_v22 = vld [vmem:[%s666_s3 + $0x8] sm:$0xff]  ;;  %v230_v23 = vld [vmem:[%s666_s3 + $0x10] sm:$0xff] }
  0x19   :  { %438 = vmatpush3.bf16.msra.mxu1 %v435_v10  ;;  %v228_v21 = vld [vmem:[%s666_s3] sm:$0xff]  ;;  %141 = vrot.lane.b32.xlu0 %v344_v20, %s523_s2  ;;  %v231_v25 = vld [vmem:[%s666_s3 + $0x18] sm:$0xff]  ;;  %v233_v28 = vld [vmem:[%s666_s3 + $0x28] sm:$0xff] }
  0x1a   :  { %440 = vmatprep.subr.bf16.mxu1 %v439_v12  ;;  %v451_v24 = vpack.c.bf16 %v229_v22, %v228_v21  ;;  %v455_v26 = vpack.c.bf16 %v231_v25, %v230_v23  ;;  %v232_v27 = vld [vmem:[%s666_s3 + $0x20] sm:$0xff]  ;;  %v234_v36 = vld [vmem:[%s666_s3 + $0x30] sm:$0xff]  ;;  %v235_v37 = vld [vmem:[%s666_s3 + $0x38] sm:$0xff]  ;;  %s524_s3 = smov [#allocation5]  }
  0x1b   :  { %434 = vmatpush3.bf16.msra.mxu0 %v431_v6  ;;  %v459_v29 = vpack.c.bf16 %v233_v28, %v232_v27  ;;  %v463_v38 = vpack.c.bf16 %v235_v37, %v234_v36  ;;  %v349_v46 = vld [vmem:[%s667_s4 + $0x1] ss:$0 sm:$0xff]  ;;  %s332_s24 = sshll.u32 %s524_s3, 4  ;;  %s333_s24 = int_to_ptr.vmem [resolvable:$true] %s332_s24 }
  0x1c   :  { %452 = vmatprep.subr.bf16.mxu0 %v451_v24  ;;  %s494_s25 = scalar_lea.vmem %s333_s24, 256  ;;  %p499_p9 = scmp.lt.s32.totalorder %s333_s24, %s333_s24 }
  0x1d   :  { %442 = vmatpush3.bf16.msra.mxu1 %v439_v12  ;;  %p495_p8 = scmp.ne.s32.totalorder %s333_s24, %s494_s25  ;;  %p500_p10 = scmp.lt.s32.totalorder %s494_s25, %s494_s25 }
  0x1e   :  { %387 = vmatmul.mubr.msk.f32.vlgmr.msra.gmra.mrb[0].mxu0 %vm49_vm0, %v36_v16  ;;  %444 = vmatprep.subr.bf16.mxu1 %v443_v15 }
  0x1f   :  { %454 = vmatpush3.bf16.msra.mxu0 %v451_v24  ;;  %p501_p11 = por %p500_p10, %p499_p9 }
  0x20   :  { %456 = vmatprep.subr.bf16.mxu0 %v455_v26 }
  0x21   :  { %446 = vmatpush3.bf16.msra.mxu1 %v443_v15  ;;  %p502_p12 = pnand %p501_p11, %p495_p8 }
  0x22   :  { %448 = vmatprep.subr.bf16.mxu1 %v447_v19 }
  0x23   :  { %458 = vmatpush3.bf16.msra.mxu0 %v455_v26 }
  0x24   :  { %460 = vmatprep.subr.bf16.mxu0 %v459_v29 }
  0x25   :  { %450 = vmatpush3.bf16.msra.mxu1 %v447_v19 }
  0x27   :  { %462 = vmatpush3.bf16.msra.mxu0 %v459_v29 }
  0x28   :  { %464 = vmatprep.subr.bf16.mxu0 %v463_v38 }
  0x2b   :  { %466 = vmatpush3.bf16.msra.mxu0 %v463_v38 }
  0x8b   :  { %v142_v39 = vpop.permute.xlu0 %141 }
  0xf1   :  { %v388_v30 = vpop.f32.mrb[0].mxu0 }
  0xf2   :  { %v128_v31 = vadd.f32 %v388_v30, %v344_v20  ;;  %v122_v32 = vpop.f32.mrb[1].mxu0 }
  0xf3   :  { %v123_v33 = vadd.f32 %v344_v20, %v122_v32 }
  0xf4   :  { %v132_v35 = vmax.f32 %v128_v31, 0.0 }
  0xf5   :  { %v131_v34 = vmax.f32 %v123_v33, 0.0 }
  0xf7   :  { %405 = vmatprep.mubr.msk.f32.mxu1 %vm144_vm1, %v131_v34 }
  0xf8   :  { %406 = vmatmul.mubr.msk.f32.vlgmr.msra.gmra.mrb[0].mxu1 %vm144_vm1, %v132_v35 }
 0x1cb   :  { %v407_v40 = vpop.f32.mrb[0].mxu1 }
 0x1cc   :  { %v223_v41 = vadd.f32 %v407_v40, %v142_v39  ;;  %v217_v42 = vpop.f32.mrb[1].mxu1 }
 0x1cd   :  { %v218_v43 = vadd.f32 %v217_v42, %v142_v39 }
 0x1ce   :  { %v227_v45 = vmax.f32 %v223_v41, 0.0 }
 0x1cf   :  { %v226_v44 = vmax.f32 %v218_v43, 0.0 }
 0x1d1   :  { %424 = vmatprep.mubr.msk.f32.mxu0 %vm144_vm1, %v226_v44 }
 0x1d2   :  { %425 = vmatmul.mubr.msk.f32.vlgmr.msra.gmra.mrb[2].mxu0 %vm144_vm1, %v227_v45 }
 0x2a5   :  { %v426_v47 = vpop.f32.mrb[2].mxu0 }
 0x2a6   :  { %v320_v48 = vadd.f32 %v426_v47, %v349_v46  ;;  %v314_v49 = vpop.f32.mrb[3].mxu0 }
 0x2a7   :  { %v315_v50 = vadd.f32 %v349_v46, %v314_v49 }
 0x2a8   :  { %v324_v51 = vadd.f32 %v320_v48, %v36_v16 }
 0x2a9   :  { %v323_v52 = vadd.f32 %v315_v50, %v582_v5 }
 0x2aa   :  { %326 = vst.msk [vmem:[#allocation5 + $0x8] sm:$0xff] %vm49_vm0, %v324_v51 }
 0x2ab   :  { %325 = vst.msk [vmem:[#allocation5] sm:$0xff] %vm49_vm0, %v323_v52 }
 0x2ac   :  { %505 = shalt.err (!%p502_p12)
}
 0x2ad   :  { %s506_s27 = scalar_lea.hbm %s668_s5, 256 }
 0x2ae   :  { %p507_p13 = scmp.ne.s32.totalorder %s668_s5, %s506_s27  ;;  %p510_p0 = scmp.lt.u32.totalorder %s506_s27, %s668_s5 }
 0x2b0   :  { %p512_p1 = pnand %p510_p0, %p507_p13 }
 0x2b2   :  { %515 = shalt.err (!%p512_p1)
}
 0x2b3   :  { %338 = dma.vmem_to_hbm [thread:$0]  %s333_s24, 256, %s668_s5, [#allocation4], %s521_s28, %s521_s28, %s522_s29  }
 0x2b4   :  { %518 = dma.done.wait [#allocation4], 256  }
 0x2b5   :  { %519 = vsyncadd [#allocation4], 4294967040 }
 0x2b6   :  { %342 = vsyncpa [#allocation3], 1 }
 0x2b7   :  { %343 = vsyncpa [#allocation4], 1 }

</bundles_post_ra>
